<compile_context>
chip_gen: v6e
topology: v6e:2x2x1
jax: 0.10.0
libtpu: 0.0.40
codegen_flags: <defaults>
</compile_context>

<pallas_src>
import jax
import jax.numpy as jnp
from jax.experimental import pallas as pl
from jax.experimental.pallas import tpu as pltpu


def _round_up(x: int, m: int) -> int:
    return ((x + m - 1) // m) * m


def _ffn_kernel_acc_out(x_ref, w1_ref, b1_ref, w2_ref, b2_ref, o_ref):
    """float32-output variant: accumulate directly into the resident output block."""
    # x_ref:  (tm, dm)   bf16 | w1_ref: (dm, tk) bf16 | b1_ref: (1, tk) f32
    # w2_ref: (tk, dm)   bf16 | b2_ref: (1, dm) f32   | o_ref:  (tm, dm) f32
    k = pl.program_id(1)

    @pl.when(k == 0)
    def _():
        o_ref[...] = jnp.zeros_like(o_ref)

    h = jnp.dot(x_ref[...], w1_ref[...], preferred_element_type=jnp.float32)
    h = jnp.maximum(h + b1_ref[...], 0.0)
    # TODO(synk): nn.Dropout is identity in eval mode; training-mode dropout
    # (with PyTorch-matching RNG) is not reproduced here.
    o_ref[...] += jnp.dot(h.astype(w2_ref.dtype), w2_ref[...],
                          preferred_element_type=jnp.float32)

    @pl.when(k == pl.num_programs(1) - 1)
    def _():
        o_ref[...] = o_ref[...] + b2_ref[...]


def _ffn_kernel_scratch(x_ref, w1_ref, b1_ref, w2_ref, b2_ref, o_ref, acc_ref):
    """Generic-output variant: f32 VMEM accumulator, cast once on finalize."""
    k = pl.program_id(1)

    @pl.when(k == 0)
    def _():
        acc_ref[...] = jnp.zeros_like(acc_ref)

    h = jnp.dot(x_ref[...], w1_ref[...], preferred_element_type=jnp.float32)
    h = jnp.maximum(h + b1_ref[...], 0.0)
    acc_ref[...] += jnp.dot(h.astype(w2_ref.dtype), w2_ref[...],
                            preferred_element_type=jnp.float32)

    @pl.when(k == pl.num_programs(1) - 1)
    def _():
        o_ref[...] = (acc_ref[...] + b2_ref[...]).astype(o_ref.dtype)


def _vmem_budget_bytes() -> int:
    """~75% of physical VMEM per core, capped; conservative fallback if query fails."""
    try:
        cap = int(pltpu.get_tpu_info().vmem_capacity_bytes)
    except Exception:
        cap = 64 * 1024 * 1024          # v7x per-TC size: safe everywhere
    return min(cap * 3 // 4, 112 * 1024 * 1024)


def _pad_cast(a, shape, dtype):
    """Cast (and only if needed, zero-pad) to `shape`/`dtype`."""
    a = a.astype(dtype)
    if a.shape == tuple(shape):
        return a                         # aligned: no extra HBM pad pass
    out = jnp.zeros(shape, dtype)
    return out.at[tuple(slice(0, s) for s in a.shape)].set(a)


def feed_forward(x, w1, b1, w2, b2, *, compute_dtype=jnp.bfloat16):
    """FFN forward. x: [..., d_model]. w1: [d_model, features], w2: [features, d_model]."""
    orig_shape = x.shape
    out_dtype = x.dtype
    d_model = orig_shape[-1]
    features = w1.shape[1]

    x2d = x.reshape(-1, d_model)
    n_tok = x2d.shape[0]

    comp_bytes = jnp.dtype(compute_dtype).itemsize
    out_bytes = jnp.dtype(out_dtype).itemsize
    acc_into_out = jnp.dtype(out_dtype) == jnp.dtype(jnp.float32)

    dm_pad = _round_up(d_model, 128)     # lane-dense, unmasked output stores
    ft128 = _round_up(features, 128)

    budget = _vmem_budget_bytes()

    # Weights-resident fast path: both bf16 weight mats (double-buffered) take
    # at most half the budget -> single k step, weights DMA'd once per kernel.
    resident = 2 * (2 * dm_pad * ft128 * comp_bytes) <= budget // 2
    tk = ft128 if resident else min(512, ft128)

    def vmem_use(tm):
        use = 2 * tm * dm_pad * comp_bytes            # x tile (double-buffered)
        use += 2 * dm_pad * tk * comp_bytes           # W1 chunk
        use += 2 * tk * dm_pad * comp_bytes           # W2 chunk
        use += 2 * (tk + dm_pad) * 4                  # biases
        use += 2 * tm * dm_pad * out_bytes            # output tile
        if not acc_into_out:
            use += tm * dm_pad * 4                    # f32 accumulator scratch
        use += tm * tk * (4 + comp_bytes)             # h temps (f32 + bf16 cast)
        return use

    # If even the smallest token tile overflows, shrink the k chunk first.
    while tk > 128 and vmem_use(128) > budget:
        tk = max(128, _round_up(tk // 2, 128))

    # Largest token tile that fits the budget (raises flops/weight-byte).
    n128 = _round_up(max(n_tok, 1), 128)
    tm = 128
    for cand in (1024, 768, 512, 384, 256, 128):
        if cand <= n128 and vmem_use(cand) <= budget:
            tm = cand
            break

    # Megacore (v7x): keep >= 2 token tiles when there are enough tokens so the
    # "parallel" axis actually uses both TensorCores.
    if n128 // tm < 2 and n_tok > 128:
        tm = _round_up(-(-n_tok // 2), 128)

    n_pad = _round_up(n_tok, tm)
    ft_pad = _round_up(features, tk)

    # Zero padding is exact: padded x cols / W1 rows contribute 0; padded hidden
    # cols give ReLU(0+0)=0 into zero W2 rows; padded output cols are sliced off.
    xp = _pad_cast(x2d, (n_pad, dm_pad), compute_dtype)
    w1p = _pad_cast(w1, (dm_pad, ft_pad), compute_dtype)
    w2p = _pad_cast(w2, (ft_pad, dm_pad), compute_dtype)
    b1p = _pad_cast(b1.reshape(1, -1), (1, ft_pad), jnp.float32)
    b2p = _pad_cast(b2.reshape(1, -1), (1, dm_pad), jnp.float32)

    grid = (n_pad // tm, ft_pad // tk)   # (tokens: parallel, features: reduction)
    n_tok_tiles = grid[0]
    w_fetches = 1 if tk == ft_pad else n_tok_tiles   # resident -> fetched once

    cost = pl.CostEstimate(
        flops=4 * n_pad * dm_pad * ft_pad,                        # two matmuls
        transcendentals=0,
        bytes_accessed=(n_pad * dm_pad * comp_bytes               # x
                        + w_fetches * dm_pad * ft_pad * comp_bytes  # W1 (re-streamed)
                        + w_fetches * ft_pad * dm_pad * comp_bytes  # W2 (re-streamed)
                        + ft_pad * 4 + dm_pad * 4                 # biases
                        + n_pad * dm_pad * out_bytes))            # output

    in_specs = [
        pl.BlockSpec((tm, dm_pad), lambda i, k: (i, 0)),   # x tile
        pl.BlockSpec((dm_pad, tk), lambda i, k: (0, k)),   # W1 chunk
        pl.BlockSpec((1, tk), lambda i, k: (0, k)),        # b1 chunk
        pl.BlockSpec((tk, dm_pad), lambda i, k: (k, 0)),   # W2 chunk
        pl.BlockSpec((1, dm_pad), lambda i, k: (0, 0)),    # b2 (full)
    ]
    out_spec = pl.BlockSpec((tm, dm_pad), lambda i, k: (i, 0))

    if acc_into_out:
        kernel, scratch = _ffn_kernel_acc_out, []
    else:
        kernel, scratch = _ffn_kernel_scratch, [pltpu.VMEM((tm, dm_pad), jnp.float32)]

    out = pl.pallas_call(
        kernel,
        out_shape=jax.ShapeDtypeStruct((n_pad, dm_pad), out_dtype),
        grid_spec=pltpu.PrefetchScalarGridSpec(
            num_scalar_prefetch=0,
            grid=grid,
            in_specs=in_specs,
            out_specs=out_spec,
            scratch_shapes=scratch,
        ),
        compiler_params=pltpu.CompilerParams(
            dimension_semantics=("parallel", "arbitrary"),
            vmem_limit_bytes=budget,
        ),
        cost_estimate=cost,
    )(xp, w1p, b1p, w2p, b2p)

    return out[:n_tok, :d_model].reshape(orig_shape)


# TODO(synk): is_gated=True path (g = act(x@W1) * (x@Wv)) not implemented; the
# PyTorch default (is_gated=False) is what this kernel reproduces.


def init_params(key, d_model, features):
    """Deterministic init mimicking nn.Linear default (uniform +/- 1/sqrt(fan_in))."""
    k1, k2, k3, k4 = jax.random.split(key, 4)
    lim1 = 1.0 / (d_model ** 0.5)
    lim2 = 1.0 / (features ** 0.5)
    # Stored directly as [in, out] (i.e. PyTorch weight transposed).
    w1 = jax.random.uniform(k1, (d_model, features), jnp.float32, -lim1, lim1)
    b1 = jax.random.uniform(k2, (features,), jnp.float32, -lim1, lim1)
    w2 = jax.random.uniform(k3, (features, d_model), jnp.float32, -lim2, lim2)
    b2 = jax.random.uniform(k4, (d_model,), jnp.float32, -lim2, lim2)
    return w1, b1, w2, b2


if __name__ == "__main__":
    batch, seq, d_model, features = 2, 8, 32, 64
    key = jax.random.PRNGKey(0)
    kx, kp = jax.random.split(key)

    x = jax.random.normal(kx, (batch, seq, d_model), dtype=jnp.float32)
    w1, b1, w2, b2 = init_params(kp, d_model, features)

    y = feed_forward(x, w1, b1, w2, b2)
    y = jax.block_until_ready(y)

    # Pure-JAX reference with the same bf16 operand casts the kernel uses.
    xb = x.reshape(-1, d_model).astype(jnp.bfloat16).astype(jnp.float32)
    w1b = w1.astype(jnp.bfloat16).astype(jnp.float32)
    w2b = w2.astype(jnp.bfloat16).astype(jnp.float32)
    h_ref = jnp.maximum(xb @ w1b + b1, 0.0)
    h_ref = h_ref.astype(jnp.bfloat16).astype(jnp.float32)
    y_ref = (h_ref @ w2b + b2).reshape(batch, seq, d_model)

    assert y.shape == (batch, seq, d_model)
    assert jnp.allclose(y, y_ref, atol=1e-3, rtol=1e-3)

    print("KERNEL_OK")
</pallas_src>

<mosaic_0001>
module attributes {stable_mosaic.version = 11 : i64} {
  func.func @_ffn_kernel_acc_out(%arg0: i32, %arg1: i32, %arg2: memref<128x128xbf16, #tpu.memory_space<vmem>>, %arg3: memref<128x128xbf16, #tpu.memory_space<vmem>>, %arg4: memref<1x128xf32, #tpu.memory_space<vmem>>, %arg5: memref<128x128xbf16, #tpu.memory_space<vmem>>, %arg6: memref<1x128xf32, #tpu.memory_space<vmem>>, %arg7: memref<128x128xf32, #tpu.memory_space<vmem>>) attributes {dimension_semantics = [#tpu.dimension_semantics<parallel>, #tpu.dimension_semantics<arbitrary>], iteration_bounds = array<i64: 1, 1>, scalar_prefetch = 0 : i64, scratch_operands = 0 : i64, tpu.core_type = #tpu.core_type<tc>, window_params = [{transform_indices = @transform_0, window_bounds = array<i64: 128, 128>}, {transform_indices = @transform_1, window_bounds = array<i64: 128, 128>}, {transform_indices = @transform_2, window_bounds = array<i64: 1, 128>}, {transform_indices = @transform_3, window_bounds = array<i64: 128, 128>}, {pipeline_mode = #tpu.pipeline_mode<synchronous>, transform_indices = @transform_4, window_bounds = array<i64: 1, 128>}, {transform_indices = @transform_5, window_bounds = array<i64: 128, 128>}]} {
    %c0_i32 = arith.constant 0 : i32
    %0 = arith.cmpi eq, %arg1, %c0_i32 : i32
    %1 = arith.extui %0 : i1 to i32
    %c0_i32_0 = arith.constant 0 : i32
    %2 = arith.cmpi ne, %1, %c0_i32_0 : i32
    scf.if %2 {
      %cst_16 = arith.constant 0.000000e+00 : f32
      %20 = vector.broadcast %cst_16 : f32 to vector<128x128xf32>
      %c0_17 = arith.constant 0 : index
      %c0_18 = arith.constant 0 : index
      %21 = vector.load %arg7[%c0_17, %c0_18] : memref<128x128xf32, #tpu.memory_space<vmem>>, vector<128x128xf32>
      tpu.vector_store %arg7[%c0_17, %c0_18], %20 {strides = array<i32>} : memref<128x128xf32, #tpu.memory_space<vmem>>, vector<128x128xf32>,
    } else {
    }
    %c0 = arith.constant 0 : index
    %c0_1 = arith.constant 0 : index
    %3 = vector.load %arg2[%c0, %c0_1] : memref<128x128xbf16, #tpu.memory_space<vmem>>, vector<128x128xbf16>
    %c0_2 = arith.constant 0 : index
    %c0_3 = arith.constant 0 : index
    %4 = vector.load %arg3[%c0_2, %c0_3] : memref<128x128xbf16, #tpu.memory_space<vmem>>, vector<128x128xbf16>
    %cst = arith.constant dense<0.000000e+00> : vector<128x128xf32>
    %5 = tpu.matmul %3, %4, %cst {dimension_numbers = #tpu.dot_dimension_numbers<[1], [0], [0], [1], [0, 0, 1, 1], [], []>} : vector<128x128xbf16>, vector<128x128xbf16>, vector<128x128xf32> -> vector<128x128xf32>
    %c0_4 = arith.constant 0 : index
    %c0_5 = arith.constant 0 : index
    %6 = vector.load %arg4[%c0_4, %c0_5] : memref<1x128xf32, #tpu.memory_space<vmem>>, vector<1x128xf32>
    %7 = vector.broadcast %6 : vector<1x128xf32> to vector<128x128xf32>
    %8 = arith.addf %5, %7 : vector<128x128xf32>
    %cst_6 = arith.constant 0.000000e+00 : f32
    %9 = vector.broadcast %cst_6 : f32 to vector<128x128xf32>
    %10 = arith.maximumf %8, %9 : vector<128x128xf32>
    %c0_7 = arith.constant 0 : index
    %c0_8 = arith.constant 0 : index
    %11 = vector.load %arg7[%c0_7, %c0_8] : memref<128x128xf32, #tpu.memory_space<vmem>>, vector<128x128xf32>
    %12 = arith.truncf %10 : vector<128x128xf32> to vector<128x128xbf16>
    %c0_9 = arith.constant 0 : index
    %c0_10 = arith.constant 0 : index
    %13 = vector.load %arg5[%c0_9, %c0_10] : memref<128x128xbf16, #tpu.memory_space<vmem>>, vector<128x128xbf16>
    %cst_11 = arith.constant dense<0.000000e+00> : vector<128x128xf32>
    %14 = tpu.matmul %12, %13, %cst_11 {dimension_numbers = #tpu.dot_dimension_numbers<[1], [0], [0], [1], [0, 0, 1, 1], [], []>} : vector<128x128xbf16>, vector<128x128xbf16>, vector<128x128xf32> -> vector<128x128xf32>
    %15 = arith.addf %11, %14 : vector<128x128xf32>
    %c0_12 = arith.constant 0 : index
    %c0_13 = arith.constant 0 : index
    %16 = vector.load %arg7[%c0_12, %c0_13] : memref<128x128xf32, #tpu.memory_space<vmem>>, vector<128x128xf32>
    tpu.vector_store %arg7[%c0_12, %c0_13], %15 {strides = array<i32>} : memref<128x128xf32, #tpu.memory_space<vmem>>, vector<128x128xf32>,
    %c0_i32_14 = arith.constant 0 : i32
    %17 = arith.cmpi eq, %arg1, %c0_i32_14 : i32
    %18 = arith.extui %17 : i1 to i32
    %c0_i32_15 = arith.constant 0 : i32
    %19 = arith.cmpi ne, %18, %c0_i32_15 : i32
    scf.if %19 {
      %c0_16 = arith.constant 0 : index
      %c0_17 = arith.constant 0 : index
      %20 = vector.load %arg7[%c0_16, %c0_17] : memref<128x128xf32, #tpu.memory_space<vmem>>, vector<128x128xf32>
      %c0_18 = arith.constant 0 : index
      %c0_19 = arith.constant 0 : index
      %21 = vector.load %arg6[%c0_18, %c0_19] : memref<1x128xf32, #tpu.memory_space<vmem>>, vector<1x128xf32>
      %22 = vector.broadcast %21 : vector<1x128xf32> to vector<128x128xf32>
      %23 = arith.addf %20, %22 : vector<128x128xf32>
      %c0_20 = arith.constant 0 : index
      %c0_21 = arith.constant 0 : index
      %24 = vector.load %arg7[%c0_20, %c0_21] : memref<128x128xf32, #tpu.memory_space<vmem>>, vector<128x128xf32>
      tpu.vector_store %arg7[%c0_20, %c0_21], %23 {strides = array<i32>} : memref<128x128xf32, #tpu.memory_space<vmem>>, vector<128x128xf32>,
    } else {
    }
    return
  }
  func.func @transform_0(%arg0: i32, %arg1: i32) -> (i32, i32) {
    %c0_i32 = arith.constant 0 : i32
    %c0_i32_0 = arith.constant 0 : i32
    return %arg0, %c0_i32 : i32, i32
  }
  func.func @transform_1(%arg0: i32, %arg1: i32) -> (i32, i32) {
    %c0_i32 = arith.constant 0 : i32
    %c0_i32_0 = arith.constant 0 : i32
    return %c0_i32, %arg1 : i32, i32
  }
  func.func @transform_2(%arg0: i32, %arg1: i32) -> (i32, i32) {
    %c0_i32 = arith.constant 0 : i32
    %c0_i32_0 = arith.constant 0 : i32
    return %c0_i32, %arg1 : i32, i32
  }
  func.func @transform_3(%arg0: i32, %arg1: i32) -> (i32, i32) {
    %c0_i32 = arith.constant 0 : i32
    %c0_i32_0 = arith.constant 0 : i32
    return %arg1, %c0_i32 : i32, i32
  }
  func.func @transform_4(%arg0: i32, %arg1: i32) -> (i32, i32) {
    %c0_i32 = arith.constant 0 : i32
    %c0_i32_0 = arith.constant 0 : i32
    %c0_i32_1 = arith.constant 0 : i32
    return %c0_i32, %c0_i32_0 : i32, i32
  }
  func.func @transform_5(%arg0: i32, %arg1: i32) -> (i32, i32) {
    %c0_i32 = arith.constant 0 : i32
    %c0_i32_0 = arith.constant 0 : i32
    return %arg0, %c0_i32 : i32, i32
  }
}

</mosaic_0001>

<bundles_post_ra>
// kernel: tpu_custom_call.1
= control target key start
LH: loop header
LB: loop body
LE: loop exit
PB: predicated region body
PF: predicated region fallthrough
CT: control target
= control target key end

     0   :  { %10 = vsyncpa [#allocation3], 0  ;;  %s921_s0 = inlined_call_operand.hbm [shape: bf16[128,128], index: 0, kind: input, shape index: {}]   ;;  %s922_s1 = inlined_call_operand.hbm [shape: bf16[128,128], index: 1, kind: input, shape index: {}]   ;;  %s923_s2 = inlined_call_operand.vmem [shape: f32[1,128], index: 2, kind: input, shape index: {}]   ;;  %s924_s3 = inlined_call_operand.hbm [shape: bf16[128,128], index: 3, kind: input, shape index: {}]   ;;  %s925_s4 = inlined_call_operand.vmem [shape: f32[1,128], index: 4, kind: input, shape index: {}]   ;;  %s926_s5 = inlined_call_operand.hbm [shape: f32[128,128], index: 5, kind: output, shape index: {}]  }
   0x1   :  { %11 = vsyncpa [#allocation6], 0 }
   0x2   :  { %12 = vsyncpa [#allocation4], 0  ;;  %s865_s18 = smov [#allocation5]   ;;  %s866_s20 = smov [#allocation2]  }
   0x3   :  { %s30_s19 = sshll.u32 %s865_s18, 4  ;;  %s18_s21 = sshll.u32 %s866_s20, 4  ;;  %s31_s19 = int_to_ptr.vmem [resolvable:$true] %s30_s19  ;;  %s19_s21 = int_to_ptr.vmem [resolvable:$true] %s18_s21 }
   0x4   :  { %s787_s22 = scalar_lea.vmem %s31_s19, 1024  ;;  %p792_p1 = scmp.lt.s32.totalorder %s31_s19, %s31_s19 }
   0x5   :  { %p788_p0 = scmp.ne.s32.totalorder %s31_s19, %s787_s22  ;;  %p793_p2 = scmp.lt.s32.totalorder %s787_s22, %s787_s22 }
   0x7   :  { %p794_p3 = por %p793_p2, %p792_p1 }
   0x9   :  { %p795_p4 = pnand %p794_p3, %p788_p0 }
   0xb   :  { %798 = shalt.err (!%p795_p4)
}
   0xc   :  { %s867_s23 = smov 64   ;;  %s868_s24 = smov 4  }
   0xd   :  { %36 = dma.hbm_to_vmem [thread:$0]  %s922_s1, 1024, %s31_s19, [#allocation6], %s867_s23, %s867_s23, %s868_s24  }
   0xe   :  { %s807_s27 = scalar_lea.vmem %s19_s21, 1024  ;;  %p812_p6 = scmp.lt.s32.totalorder %s19_s21, %s19_s21 }
   0xf   :  { %p808_p5 = scmp.ne.s32.totalorder %s19_s21, %s807_s27  ;;  %p813_p7 = scmp.lt.s32.totalorder %s807_s27, %s807_s27 }
  0x11   :  { %p814_p8 = por %p813_p7, %p812_p6 }
  0x13   :  { %p815_p9 = pnand %p814_p8, %p808_p5 }
  0x15   :  { %818 = shalt.err (!%p815_p9)
}
  0x16   :  { %24 = dma.hbm_to_vmem [thread:$0]  %s921_s0, 1024, %s19_s21, [#allocation3], %s867_s23, %s867_s23, %s868_s24  }
  0x17   :  { %s869_s30 = smov [#allocation7]  }
  0x18   :  { %s44_s6 = sshll.u32 %s869_s30, 4  ;;  %s45_s6 = int_to_ptr.vmem [resolvable:$true] %s44_s6 }
  0x19   :  { %s827_s7 = scalar_lea.vmem %s45_s6, 1024  ;;  %p832_p11 = scmp.lt.s32.totalorder %s45_s6, %s45_s6 }
  0x1a   :  { %p828_p10 = scmp.ne.s32.totalorder %s45_s6, %s827_s7  ;;  %p833_p12 = scmp.lt.s32.totalorder %s827_s7, %s827_s7 }
  0x1c   :  { %p834_p13 = por %p833_p12, %p832_p11 }
  0x1e   :  { %p835_p0 = pnand %p834_p13, %p828_p10 }
  0x20   :  { %838 = shalt.err (!%p835_p0)
}
  0x21   :  { %50 = dma.hbm_to_vmem [thread:$0]  %s924_s3, 1024, %s45_s6, [#allocation6], %s867_s23, %s867_s23, %s868_s24  }
  0x22   :  { %859 = dma.done.wait [#allocation3], 1024  }
  0x23   :  { %860 = vsyncadd [#allocation3], 4294966272 }
  0x24   :  { %861 = dma.done.wait [#allocation6], 2048  }
  0x25   :  { %862 = vsyncadd [#allocation6], 4294965248  ;;  %v755_v0 = vld [vmem:[#allocation5 + $0x38] sm:$0xff]   ;;  %v756_v1 = vld [vmem:[#allocation5 + $0x30] sm:$0xff]  }
  0x26   :  { %682 = vmatprep.subr.bf16.mxu0 %v755_v0  ;;  %v757_v2 = vld [vmem:[#allocation5 + $0x28] sm:$0xff]   ;;  %v758_v3 = vld [vmem:[#allocation5 + $0x20] sm:$0xff]   ;;  %v759_v5 = vld [vmem:[#allocation5 + $0x18] sm:$0xff]  }
  0x27   :  { %683 = vmatpush3.bf16.msra.mxu0 %v755_v0  ;;  %v763_v4 = vld [vmem:[#allocation2] sm:$0xff]   ;;  %v760_v6 = vld [vmem:[#allocation5 + $0x10] sm:$0xff]   ;;  %v771_v7 = vld [vmem:[#allocation7 + $0x38] sm:$0xff]  }
  0x28   :  { %684 = vmatprep.subr.bf16.mxu0 %v756_v1  ;;  %698 = vmatprep.mubr.bf16.mxu0 %v763_v4  ;;  %v772_v8 = vld [vmem:[#allocation7 + $0x30] sm:$0xff]   ;;  %v761_v9 = vld [vmem:[#allocation5 + $0x8] sm:$0xff]   ;;  %v762_v11 = vld [vmem:[#allocation5] sm:$0xff]  }
  0x29   :  { %714 = vmatprep.subr.bf16.mxu1 %v771_v7  ;;  %v773_v10 = vld [vmem:[#allocation7 + $0x28] sm:$0xff]   ;;  %v774_v12 = vld [vmem:[#allocation7 + $0x20] sm:$0xff]   ;;  %v775_v13 = vld [vmem:[#allocation7 + $0x18] sm:$0xff]  }
  0x2a   :  { %715 = vmatpush3.bf16.msra.mxu1 %v771_v7  ;;  %v764_v14 = vld [vmem:[#allocation2 + $0x8] sm:$0xff]   ;;  %v765_v15 = vld [vmem:[#allocation2 + $0x10] sm:$0xff]   ;;  %v766_v16 = vld [vmem:[#allocation2 + $0x18] sm:$0xff]  }
  0x2b   :  { %685 = vmatpush3.bf16.msra.mxu0 %v756_v1  ;;  %716 = vmatprep.subr.bf16.mxu1 %v772_v8  ;;  %v767_v17 = vld [vmem:[#allocation2 + $0x20] sm:$0xff]   ;;  %v768_v18 = vld [vmem:[#allocation2 + $0x28] sm:$0xff]   ;;  %v769_v19 = vld [vmem:[#allocation2 + $0x30] sm:$0xff]  }
  0x2c   :  { %686 = vmatprep.subr.bf16.mxu0 %v757_v2  ;;  %v770_v20 = vld [vmem:[#allocation2 + $0x38] sm:$0xff]   ;;  %v776_v21 = vld [vmem:[#allocation7 + $0x10] sm:$0xff]   ;;  %v777_v22 = vld [vmem:[#allocation7 + $0x8] sm:$0xff]  }
  0x2d   :  { %v778_v23 = vld [vmem:[#allocation7] sm:$0xff]  }
  0x2e   :  { %717 = vmatpush3.bf16.msra.mxu1 %v772_v8  ;;  %v624_v26 = vld [vmem:[%s923_s2] ss:$0 sm:$0xff] }
  0x2f   :  { %687 = vmatpush3.bf16.msra.mxu0 %v757_v2  ;;  %718 = vmatprep.subr.bf16.mxu1 %v773_v10 }
  0x30   :  { %688 = vmatprep.subr.bf16.mxu0 %v758_v3 }
  0x32   :  { %719 = vmatpush3.bf16.msra.mxu1 %v773_v10 }
  0x33   :  { %689 = vmatpush3.bf16.msra.mxu0 %v758_v3  ;;  %720 = vmatprep.subr.bf16.mxu1 %v774_v12 }
  0x34   :  { %690 = vmatprep.subr.bf16.mxu0 %v759_v5 }
  0x36   :  { %721 = vmatpush3.bf16.msra.mxu1 %v774_v12 }
  0x37   :  { %691 = vmatpush3.bf16.msra.mxu0 %v759_v5  ;;  %722 = vmatprep.subr.bf16.mxu1 %v775_v13 }
  0x38   :  { %692 = vmatprep.subr.bf16.mxu0 %v760_v6 }
  0x3a   :  { %723 = vmatpush3.bf16.msra.mxu1 %v775_v13 }
  0x3b   :  { %693 = vmatpush3.bf16.msra.mxu0 %v760_v6  ;;  %724 = vmatprep.subr.bf16.mxu1 %v776_v21 }
  0x3c   :  { %694 = vmatprep.subr.bf16.mxu0 %v761_v9 }
  0x3e   :  { %725 = vmatpush3.bf16.msra.mxu1 %v776_v21 }
  0x3f   :  { %695 = vmatpush3.bf16.msra.mxu0 %v761_v9  ;;  %726 = vmatprep.subr.bf16.mxu1 %v777_v22 }
  0x40   :  { %696 = vmatprep.subr.bf16.mxu0 %v762_v11 }
  0x42   :  { %727 = vmatpush3.bf16.msra.mxu1 %v777_v22 }
  0x43   :  { %697 = vmatpush3.bf16.msra.mxu0 %v762_v11  ;;  %728 = vmatprep.subr.bf16.mxu1 %v778_v23 }
  0x46   :  { %699 = vmatmul.mubr.bf16.vlgmr.msra.gmra.mxu0 %v764_v14  ;;  %729 = vmatpush3.bf16.msra.mxu1 %v778_v23 }
  0x47   :  { %702 = vmatprep.mubr.bf16.mxu0 %v765_v15 }
  0x4e   :  { %703 = vmatmul.mubr.bf16.gmra.mxu0 %v766_v16 }
  0x4f   :  { %706 = vmatprep.mubr.bf16.mxu0 %v767_v17 }
  0x56   :  { %707 = vmatmul.mubr.bf16.gmra.mxu0 %v768_v18  ;;  %v649_v18 = vld [vmem:[%s925_s4] ss:$0 sm:$0xff]  ;;  %s870_s4 = smov [#allocation8]  }
  0x57   :  { %710 = vmatprep.mubr.bf16.mxu0 %v769_v19  ;;  %s611_s10 = sshll.u32 %s870_s4, 4  ;;  %s612_s10 = int_to_ptr.vmem [resolvable:$true] %s611_s10 }
  0x58   :  { %s839_s11 = scalar_lea.vmem %s612_s10, 2048  ;;  %p844_p2 = scmp.lt.s32.totalorder %s612_s10, %s612_s10 }
  0x59   :  { %p840_p1 = scmp.ne.s32.totalorder %s612_s10, %s839_s11  ;;  %p845_p3 = scmp.lt.s32.totalorder %s839_s11, %s839_s11 }
  0x5b   :  { %p846_p4 = por %p845_p3, %p844_p2 }
  0x5d   :  { %p847_p5 = pnand %p846_p4, %p840_p1 }
  0x5e   :  { %711 = vmatmul.mubr.bf16.gmra.mxu0 %v770_v20 }
 0x106   :  { %v700_v24 = vpop.f32.mrf.mxu0 }
 0x107   :  { %v261_v30 = vadd.f32 %v700_v24, %v624_v26 }
 0x108   :  { %v252_v25 = vpop.f32.mrf.mxu0 }
 0x109   :  { %v253_v28 = vadd.f32 %v624_v26, %v252_v25  ;;  %v317_v37 = vmax.f32 %v261_v30, 0.0 }
 0x10a   :  { %v701_v27 = vpop.f32.mrf.mxu0 }
 0x10b   :  { %v264_v29 = vadd.f32 %v701_v27, %v624_v26  ;;  %v315_v35 = vmax.f32 %v253_v28, 0.0 }
 0x10c   :  { %v255_v31 = vpop.f32.mrf.mxu0 }
 0x10d   :  { %v256_v32 = vadd.f32 %v624_v26, %v255_v31  ;;  %v318_v33 = vmax.f32 %v264_v29, 0.0 }
 0x10e   :  { %v704_v34 = vpop.f32.mrf.mxu0 }
 0x10f   :  { %v316_v36 = vmax.f32 %v256_v32, 0.0  ;;  %v348_v40 = vpack.c.bf16 %v318_v33, %v317_v37  ;;  %v277_v44 = vadd.f32 %v704_v34, %v624_v26 }
 0x110   :  { %v268_v38 = vpop.f32.mrf.mxu0 }
 0x111   :  { %v347_v39 = vpack.c.bf16 %v316_v36, %v315_v35  ;;  %v269_v42 = vadd.f32 %v624_v26, %v268_v38  ;;  %v321_v51 = vmax.f32 %v277_v44, 0.0 }
 0x112   :  { %v705_v41 = vpop.f32.mrf.mxu0 }
 0x113   :  { %v280_v43 = vadd.f32 %v705_v41, %v624_v26  ;;  %730 = vmatprep.mubr.bf16.mxu1 %v347_v39  ;;  %v319_v49 = vmax.f32 %v269_v42, 0.0 }
 0x114   :  { %v271_v45 = vpop.f32.mrf.mxu0  ;;  %731 = vmatmul.mubr.bf16.vlgmr.msra.gmra.mxu1 %v348_v40 }
 0x115   :  { %v272_v46 = vadd.f32 %v624_v26, %v271_v45  ;;  %v322_v47 = vmax.f32 %v280_v43, 0.0 }
 0x116   :  { %v708_v48 = vpop.f32.mrf.mxu0 }
 0x117   :  { %v320_v50 = vmax.f32 %v272_v46, 0.0  ;;  %v350_v54 = vpack.c.bf16 %v322_v47, %v321_v51  ;;  %v293_v58 = vadd.f32 %v708_v48, %v624_v26 }
 0x118   :  { %v284_v52 = vpop.f32.mrf.mxu0 }
 0x119   :  { %v349_v53 = vpack.c.bf16 %v320_v50, %v319_v49  ;;  %v285_v56 = vadd.f32 %v624_v26, %v284_v52  ;;  %v325_v1 = vmax.f32 %v293_v58, 0.0 }
 0x11a   :  { %v709_v55 = vpop.f32.mrf.mxu0 }
 0x11b   :  { %v296_v57 = vadd.f32 %v709_v55, %v624_v26  ;;  %734 = vmatprep.mubr.bf16.mxu1 %v349_v53  ;;  %v323_v63 = vmax.f32 %v285_v56, 0.0 }
 0x11c   :  { %v287_v59 = vpop.f32.mrf.mxu0  ;;  %735 = vmatmul.mubr.bf16.gmra.mxu1 %v350_v54 }
 0x11d   :  { %v288_v60 = vadd.f32 %v624_v26, %v287_v59  ;;  %v326_v61 = vmax.f32 %v296_v57, 0.0 }
 0x11e   :  { %v712_v62 = vpop.f32.mrf.mxu0 }
 0x11f   :  { %v324_v0 = vmax.f32 %v288_v60, 0.0  ;;  %v352_v4 = vpack.c.bf16 %v326_v61, %v325_v1  ;;  %v309_v8 = vadd.f32 %v712_v62, %v624_v26 }
 0x120   :  { %v300_v2 = vpop.f32.mrf.mxu0 }
 0x121   :  { %v351_v3 = vpack.c.bf16 %v324_v0, %v323_v63  ;;  %v301_v6 = vadd.f32 %v624_v26, %v300_v2  ;;  %v329_v14 = vmax.f32 %v309_v8, 0.0 }
 0x122   :  { %v713_v5 = vpop.f32.mrf.mxu0 }
 0x123   :  { %v312_v7 = vadd.f32 %v713_v5, %v624_v26  ;;  %738 = vmatprep.mubr.bf16.mxu1 %v351_v3  ;;  %v327_v12 = vmax.f32 %v301_v6, 0.0 }
 0x124   :  { %v303_v9 = vpop.f32.mrf.mxu0  ;;  %739 = vmatmul.mubr.bf16.gmra.mxu1 %v352_v4 }
 0x125   :  { %v304_v10 = vadd.f32 %v624_v26, %v303_v9  ;;  %v330_v11 = vmax.f32 %v312_v7, 0.0 }
 0x127   :  { %v328_v13 = vmax.f32 %v304_v10, 0.0  ;;  %v354_v16 = vpack.c.bf16 %v330_v11, %v329_v14 }
 0x129   :  { %v353_v15 = vpack.c.bf16 %v328_v13, %v327_v12 }
 0x12b   :  { %742 = vmatprep.mubr.bf16.mxu1 %v353_v15 }
 0x12c   :  { %743 = vmatmul.mubr.bf16.gmra.mxu1 %v354_v16 }
 0x1d4   :  { %v732_v17 = vpop.f32.mrf.mxu1 }
 0x1d5   :  { %v576_v20 = vadd.f32 %v732_v17, %v649_v18 }
 0x1d6   :  { %v453_v19 = vpop.f32.mrf.mxu1 }
 0x1d7   :  { %592 = vst [vmem:[#allocation8 + $0x10] sm:$0xff] %v576_v20  ;;  %v574_v22 = vadd.f32 %v649_v18, %v453_v19 }
 0x1d8   :  { %v733_v21 = vpop.f32.mrf.mxu1 }
 0x1d9   :  { %590 = vst [vmem:[#allocation8] sm:$0xff] %v574_v22  ;;  %v577_v24 = vadd.f32 %v733_v21, %v649_v18 }
 0x1da   :  { %v456_v23 = vpop.f32.mrf.mxu1 }
 0x1db   :  { %593 = vst [vmem:[#allocation8 + $0x18] sm:$0xff] %v577_v24  ;;  %v575_v26 = vadd.f32 %v649_v18, %v456_v23 }
 0x1dc   :  { %v736_v25 = vpop.f32.mrf.mxu1 }
 0x1dd   :  { %591 = vst [vmem:[#allocation8 + $0x8] sm:$0xff] %v575_v26  ;;  %v580_v28 = vadd.f32 %v736_v25, %v649_v18 }
 0x1de   :  { %v469_v27 = vpop.f32.mrf.mxu1 }
 0x1df   :  { %596 = vst [vmem:[#allocation8 + $0x30] sm:$0xff] %v580_v28  ;;  %v578_v30 = vadd.f32 %v649_v18, %v469_v27 }
 0x1e0   :  { %v737_v29 = vpop.f32.mrf.mxu1 }
 0x1e1   :  { %594 = vst [vmem:[#allocation8 + $0x20] sm:$0xff] %v578_v30  ;;  %v581_v32 = vadd.f32 %v737_v29, %v649_v18 }
 0x1e2   :  { %v472_v31 = vpop.f32.mrf.mxu1 }
 0x1e3   :  { %597 = vst [vmem:[#allocation8 + $0x38] sm:$0xff] %v581_v32  ;;  %v579_v34 = vadd.f32 %v649_v18, %v472_v31 }
 0x1e4   :  { %v740_v33 = vpop.f32.mrf.mxu1 }
 0x1e5   :  { %595 = vst [vmem:[#allocation8 + $0x28] sm:$0xff] %v579_v34  ;;  %v584_v36 = vadd.f32 %v740_v33, %v649_v18 }
 0x1e6   :  { %v485_v35 = vpop.f32.mrf.mxu1 }
 0x1e7   :  { %600 = vst [vmem:[#allocation8 + $0x50] sm:$0xff] %v584_v36  ;;  %v582_v38 = vadd.f32 %v649_v18, %v485_v35 }
 0x1e8   :  { %v741_v37 = vpop.f32.mrf.mxu1 }
 0x1e9   :  { %598 = vst [vmem:[#allocation8 + $0x40] sm:$0xff] %v582_v38  ;;  %v585_v40 = vadd.f32 %v741_v37, %v649_v18 }
 0x1ea   :  { %v488_v39 = vpop.f32.mrf.mxu1 }
 0x1eb   :  { %601 = vst [vmem:[#allocation8 + $0x58] sm:$0xff] %v585_v40  ;;  %v583_v42 = vadd.f32 %v649_v18, %v488_v39 }
 0x1ec   :  { %v744_v41 = vpop.f32.mrf.mxu1 }
 0x1ed   :  { %599 = vst [vmem:[#allocation8 + $0x48] sm:$0xff] %v583_v42  ;;  %v588_v44 = vadd.f32 %v744_v41, %v649_v18 }
 0x1ee   :  { %v501_v43 = vpop.f32.mrf.mxu1 }
 0x1ef   :  { %604 = vst [vmem:[#allocation8 + $0x70] sm:$0xff] %v588_v44  ;;  %v586_v46 = vadd.f32 %v649_v18, %v501_v43 }
 0x1f0   :  { %v745_v45 = vpop.f32.mrf.mxu1 }
 0x1f1   :  { %602 = vst [vmem:[#allocation8 + $0x60] sm:$0xff] %v586_v46  ;;  %v589_v48 = vadd.f32 %v745_v45, %v649_v18 }
 0x1f2   :  { %v504_v47 = vpop.f32.mrf.mxu1 }
 0x1f3   :  { %605 = vst [vmem:[#allocation8 + $0x78] sm:$0xff] %v589_v48  ;;  %v587_v49 = vadd.f32 %v649_v18, %v504_v47 }
 0x1f5   :  { %603 = vst [vmem:[#allocation8 + $0x68] sm:$0xff] %v587_v49 }
 0x1f6   :  { %850 = shalt.err (!%p847_p5)
}
 0x1f7   :  { %s871_s12 = smov 128   ;;  %s872_s13 = smov 8  }
 0x1f8   :  { %617 = dma.vmem_to_hbm [thread:$0]  %s612_s10, 2048, %s926_s5, [#allocation4], %s871_s12, %s871_s12, %s872_s13  }
 0x1f9   :  { %863 = dma.done.wait [#allocation4], 2048  }
 0x1fa   :  { %864 = vsyncadd [#allocation4], 4294965248 }
 0x1fb   :  { %621 = vsyncpa [#allocation3], 1 }
 0x1fc   :  { %622 = vsyncpa [#allocation6], 1 }
 0x1fd   :  { %623 = vsyncpa [#allocation4], 1 }

</bundles_post_ra>
